<compile_context>
chip_gen: v7x
topology: tpu7x:2x2x1
jax: 0.10.0
libtpu: 0.0.40
codegen_flags: <defaults>
</compile_context>

<pallas_src>
import jax
import jax.numpy as jnp
from jax.experimental import pallas as pl
from jax.experimental.pallas import tpu as pltpu

D_IN = 512
D_OUT = 512


def _round_up(n: int, m: int) -> int:
    return ((n + m - 1) // m) * m


def _cdiv(a: int, b: int) -> int:
    return -(-a // b)


def att_img_kernel(x_ref, wt_ref, b_ref, o_ref):
    # x_ref : (TB, D_IN)      f32 input tile (trailing block may be partial)
    # wt_ref: (D_IN, D_OUT)   bf16 transposed linear weight (resident, 1-buf)
    # b_ref : (1, D_OUT)      f32 bias (resident, 1-buf)
    # o_ref : (TB, D_OUT)     f32 output tile
    x = x_ref[...]
    # bf16 operands -> native MXU rate; accumulate in f32.
    y = jnp.dot(x.astype(jnp.bfloat16), wt_ref[...],
                preferred_element_type=jnp.float32)
    y = y + b_ref[...]                                # broadcast bias over rows
    # sigmoid(y) == 0.5*(tanh(y/2)+1): stable for all y, tanh sits on the EUP
    # slot instead of a VALU divide sequence.
    mask = 0.5 * (jnp.tanh(0.5 * y) + 1.0)            # Mask1 = sigmoid(fc(x))
    o_ref[...] = (x + mask * x).astype(o_ref.dtype)   # G1 = x + Mask1 * x


def prepare_params(weight, bias):
    """One-time conversion of PyTorch-layout params to the kernel layout.

    weight : (out_features, in_features) -> (D_IN, D_OUT) bf16 (pre-transposed)
    bias   : (out_features,)             -> (1, D_OUT) f32
    Call once at model-init time, not per forward call.
    """
    w_t = jnp.asarray(weight).T.astype(jnp.bfloat16)          # (D_IN, D_OUT)
    b2 = jnp.asarray(bias, dtype=jnp.float32).reshape(1, D_OUT)
    return w_t, b2


def _choose_tile(B: int, tb: int) -> int:
    """Pick a balanced batch tile.

    - rows aligned to 16 (bf16 sublane packing for the in-kernel cast)
    - big batches: an even number of near-equal steps so the 'parallel' grid
      axis splits evenly over v7x's two TensorCores (harmless serial loop on
      single-TC v5e/v6e)
    - tiny batches: a single step (no per-step overhead paid for nothing)
    """
    ALIGN = 16
    B_al = _round_up(max(B, 1), ALIGN)
    tb = max(ALIGN, min(_round_up(tb, ALIGN), B_al))
    n_steps = _cdiv(B_al, tb)
    if n_steps == 1:
        if B_al >= 256:            # big enough that 2 balanced steps help v7x
            n_steps = 2
    elif n_steps % 2 == 1:
        n_steps += 1               # even, balanced step count
    return _round_up(_cdiv(B_al, n_steps), ALIGN)


def att_img_net(x, w_t, b2, *, tb=1024):
    """Forward pass of AttImgNet.

    x   : (B, 512) float32
    w_t : (512, 512) bf16, already transposed (from prepare_params)
    b2  : (1, 512) float32 (from prepare_params)
    tb  : target batch tile (default 1024; sweep 512/1024/2048 if desired).
    """
    B, D = x.shape
    assert D == D_IN
    assert w_t.shape == (D_IN, D_OUT) and b2.shape == (1, D_OUT)

    tb_eff = _choose_tile(B, tb)
    grid = (_cdiv(B, tb_eff),)     # trailing partial block handled by Pallas

    # Actual VMEM footprint: double-buffered f32 x/out tiles + resident bf16
    # weight + bias; 1.5x headroom, floored at 16 MiB, capped < v7x's 64 MiB.
    vmem_bytes = (2 * tb_eff * (D_IN + D_OUT) * 4
                  + D_IN * D_OUT * 2 + 8 * D_OUT * 4)
    vmem_limit = min(max(int(1.5 * vmem_bytes), 16 * 1024 * 1024),
                     60 * 1024 * 1024)

    cost = pl.CostEstimate(
        flops=2 * B * D_IN * D_OUT,
        transcendentals=B * D_OUT,                      # tanh (sigmoid)
        bytes_accessed=(B * D_IN * 4 + B * D_OUT * 4
                        + D_IN * D_OUT * 2 + D_OUT * 4),
    )

    return pl.pallas_call(
        att_img_kernel,
        out_shape=jax.ShapeDtypeStruct((B, D_OUT), x.dtype),
        grid_spec=pltpu.PrefetchScalarGridSpec(
            num_scalar_prefetch=0,
            grid=grid,
            in_specs=[
                # x tile: pipelined (double-buffered) along the batch grid.
                pl.BlockSpec((tb_eff, D_IN), lambda i: (i, 0)),
                # Weight / bias are constant across the grid -> single buffer.
                pl.BlockSpec((D_IN, D_OUT), lambda i: (0, 0),
                             pipeline_mode=pl.Buffered(1)),
                pl.BlockSpec((1, D_OUT), lambda i: (0, 0),
                             pipeline_mode=pl.Buffered(1)),
            ],
            out_specs=pl.BlockSpec((tb_eff, D_OUT), lambda i: (i, 0)),
        ),
        compiler_params=pltpu.CompilerParams(
            dimension_semantics=("parallel",),
            vmem_limit_bytes=vmem_limit,
        ),
        cost_estimate=cost,
    )(x, w_t, b2)


if __name__ == "__main__":
    key = jax.random.PRNGKey(0)
    kx, kw, kb = jax.random.split(key, 3)

    # Deterministic synthetic parameters (PyTorch nn.Linear shape conventions).
    bound = 1.0 / (D_IN ** 0.5)
    weight = jax.random.uniform(kw, (D_OUT, D_IN), jnp.float32, -bound, bound)
    bias = jax.random.uniform(kb, (D_OUT,), jnp.float32, -bound, bound)

    # One-time param prep (transpose + bf16 cast) outside the hot path.
    w_t, b2 = prepare_params(weight, bias)

    # Small batch (single grid step).
    B = 8
    x = jax.random.normal(kx, (B, D_IN), dtype=jnp.float32)
    out = jax.block_until_ready(att_img_net(x, w_t, b2))
    ref = x + jax.nn.sigmoid(x @ weight.T + bias) * x
    assert out.shape == (B, D_OUT)
    # bf16 matmul operands with f32 accumulation -> looser tolerance.
    assert jnp.allclose(out, ref, atol=2e-2, rtol=2e-2), float(
        jnp.max(jnp.abs(out - ref)))

    # Non-divisible batch: exercises the masked partial trailing block
    # (no external pad / slice copies).
    B2 = 13
    x2 = jax.random.normal(kx, (B2, D_IN), dtype=jnp.float32)
    out2 = jax.block_until_ready(att_img_net(x2, w_t, b2))
    ref2 = x2 + jax.nn.sigmoid(x2 @ weight.T + bias) * x2
    assert out2.shape == (B2, D_OUT)
    assert jnp.allclose(out2, ref2, atol=2e-2, rtol=2e-2), float(
        jnp.max(jnp.abs(out2 - ref2)))

    print("KERNEL_OK")
</pallas_src>

<mosaic_0001>
module attributes {stable_mosaic.version = 11 : i64} {
  func.func @att_img_kernel(%arg0: i32, %arg1: memref<16x512xf32, #tpu.memory_space<vmem>>, %arg2: memref<512x512xbf16, #tpu.memory_space<vmem>>, %arg3: memref<1x512xf32, #tpu.memory_space<vmem>>, %arg4: memref<16x512xf32, #tpu.memory_space<vmem>>) attributes {dimension_semantics = [#tpu.dimension_semantics<parallel>], iteration_bounds = array<i64: 1>, scalar_prefetch = 0 : i64, scratch_operands = 0 : i64, tpu.core_type = #tpu.core_type<tc>, window_params = [{transform_indices = @transform_0, window_bounds = array<i64: 16, 512>}, {pipeline_mode = #tpu.pipeline_mode<synchronous>, transform_indices = @transform_1, window_bounds = array<i64: 512, 512>}, {pipeline_mode = #tpu.pipeline_mode<synchronous>, transform_indices = @transform_2, window_bounds = array<i64: 1, 512>}, {transform_indices = @transform_3, window_bounds = array<i64: 16, 512>}]} {
    %c0 = arith.constant 0 : index
    %c0_0 = arith.constant 0 : index
    %0 = vector.load %arg1[%c0, %c0_0] : memref<16x512xf32, #tpu.memory_space<vmem>>, vector<16x512xf32>
    %1 = arith.truncf %0 : vector<16x512xf32> to vector<16x512xbf16>
    %c0_1 = arith.constant 0 : index
    %c0_2 = arith.constant 0 : index
    %2 = vector.load %arg2[%c0_1, %c0_2] : memref<512x512xbf16, #tpu.memory_space<vmem>>, vector<512x512xbf16>
    %cst = arith.constant dense<0.000000e+00> : vector<16x512xf32>
    %3 = tpu.matmul %1, %2, %cst {dimension_numbers = #tpu.dot_dimension_numbers<[1], [0], [0], [1], [0, 0, 1, 1], [], []>} : vector<16x512xbf16>, vector<512x512xbf16>, vector<16x512xf32> -> vector<16x512xf32>
    %c0_3 = arith.constant 0 : index
    %c0_4 = arith.constant 0 : index
    %4 = vector.load %arg3[%c0_3, %c0_4] : memref<1x512xf32, #tpu.memory_space<vmem>>, vector<1x512xf32>
    %5 = vector.broadcast %4 : vector<1x512xf32> to vector<16x512xf32>
    %6 = arith.addf %3, %5 : vector<16x512xf32>
    %cst_5 = arith.constant 5.000000e-01 : f32
    %7 = vector.broadcast %cst_5 : f32 to vector<16x512xf32>
    %8 = arith.mulf %7, %6 : vector<16x512xf32>
    %9 = math.tanh %8 : vector<16x512xf32>
    %cst_6 = arith.constant 1.000000e+00 : f32
    %10 = vector.broadcast %cst_6 : f32 to vector<16x512xf32>
    %11 = arith.addf %9, %10 : vector<16x512xf32>
    %cst_7 = arith.constant 5.000000e-01 : f32
    %12 = vector.broadcast %cst_7 : f32 to vector<16x512xf32>
    %13 = arith.mulf %12, %11 : vector<16x512xf32>
    %14 = arith.mulf %13, %0 : vector<16x512xf32>
    %15 = arith.addf %0, %14 : vector<16x512xf32>
    %c0_8 = arith.constant 0 : index
    %c0_9 = arith.constant 0 : index
    %16 = vector.load %arg4[%c0_8, %c0_9] : memref<16x512xf32, #tpu.memory_space<vmem>>, vector<16x512xf32>
    tpu.vector_store %arg4[%c0_8, %c0_9], %15 {strides = array<i32>} : memref<16x512xf32, #tpu.memory_space<vmem>>, vector<16x512xf32>,
    return
  }
  func.func @transform_0(%arg0: i32) -> (i32, i32) {
    %c0_i32 = arith.constant 0 : i32
    %c0_i32_0 = arith.constant 0 : i32
    return %arg0, %c0_i32 : i32, i32
  }
  func.func @transform_1(%arg0: i32) -> (i32, i32) {
    %c0_i32 = arith.constant 0 : i32
    %c0_i32_0 = arith.constant 0 : i32
    %c0_i32_1 = arith.constant 0 : i32
    return %c0_i32, %c0_i32_0 : i32, i32
  }
  func.func @transform_2(%arg0: i32) -> (i32, i32) {
    %c0_i32 = arith.constant 0 : i32
    %c0_i32_0 = arith.constant 0 : i32
    %c0_i32_1 = arith.constant 0 : i32
    return %c0_i32, %c0_i32_0 : i32, i32
  }
  func.func @transform_3(%arg0: i32) -> (i32, i32) {
    %c0_i32 = arith.constant 0 : i32
    %c0_i32_0 = arith.constant 0 : i32
    return %arg0, %c0_i32 : i32, i32
  }
}

</mosaic_0001>

<bundles_post_ra>
// kernel: tpu_custom_call.1
= control target key start
LH: loop header
LB: loop body
LE: loop exit
PB: predicated region body
PF: predicated region fallthrough
CT: control target
= control target key end

     0   :  { %8 = vsyncpa [#allocation3], 0  ;;  %s1634_s0 = inlined_call_operand.hbm [shape: f32[8,512], index: 0, kind: input, shape index: {}]   ;;  %s1635_s1 = inlined_call_operand.hbm [shape: bf16[512,512], index: 1, kind: input, shape index: {}]   ;;  %s1636_s2 = inlined_call_operand.vmem [shape: f32[1,512], index: 2, kind: input, shape index: {}]   ;;  %s1637_s3 = inlined_call_operand.hbm [shape: f32[8,512], index: 3, kind: output, shape index: {}]  }
   0x1   :  { %9 = vsyncpa [#allocation6], 0 }
   0x2   :  { %10 = vsyncpa [#allocation4], 0 }
   0x3   :  { %15 = vsyncadd [#allocation3], 512  ;;  %s1522_s12 = smov [#allocation2]   ;;  %s1450_s16 = scalar_lea.hbm %s1634_s0, 512 }
   0x4   :  { %s16_s13 = sshll.u32 %s1522_s12, 4  ;;  %p1451_p0 = scmp.ne.s32.totalorder %s1634_s0, %s1450_s16  ;;  %s17_s13 = int_to_ptr.vmem [resolvable:$true] %s16_s13 }
   0x5   :  { %p1454_p1 = scmp.lt.u32.totalorder %s1450_s16, %s1634_s0 }
   0x7   :  { %p1456_p2 = pnand %p1454_p1, %p1451_p0 }
   0x9   :  { %1459 = shalt.err (!%p1456_p2)
}
   0xa   :  { %s1460_s21 = scalar_lea.vmem %s17_s13, 512  ;;  %s1464_s22 = scalar_lea.vmem %s17_s13, 1024 }
   0xb   :  { %p1461_p3 = scmp.ne.s32.totalorder %s17_s13, %s1460_s21  ;;  %p1465_p4 = scmp.lt.s32.totalorder %s17_s13, %s17_s13 }
   0xc   :  { %p1466_p5 = scmp.lt.s32.totalorder %s1464_s22, %s1460_s21 }
   0xe   :  { %p1467_p6 = por %p1466_p5, %p1465_p4 }
  0x10   :  { %p1468_p7 = pnand %p1467_p6, %p1461_p3 }
  0x12   :  { %1471 = shalt.err (!%p1468_p7)
}
  0x13   :  { %s1523_s23 = smov 512   ;;  %s1524_s24 = smov 32  }
  0x14   :  { %22 = dma.hbm_to_vmem [thread:$0]  %s1634_s0, 512, %s17_s13, [#allocation3], %s1523_s23, %s1523_s23, %s1524_s24  }
  0x15   :  { %s1525_s27 = smov [#allocation5]   ;;  %s1472_s4 = scalar_lea.hbm %s1635_s1, 16384 }
  0x16   :  { %s28_s28 = sshll.u32 %s1525_s27, 4  ;;  %p1473_p8 = scmp.ne.s32.totalorder %s1635_s1, %s1472_s4  ;;  %s29_s28 = int_to_ptr.vmem [resolvable:$true] %s28_s28 }
  0x17   :  { %p1476_p9 = scmp.lt.u32.totalorder %s1472_s4, %s1635_s1 }
  0x19   :  { %p1478_p10 = pnand %p1476_p9, %p1473_p8 }
  0x1b   :  { %1481 = shalt.err (!%p1478_p10)
}
  0x1c   :  { %s1482_s9 = scalar_lea.vmem %s29_s28, 16384  ;;  %p1487_p12 = scmp.lt.s32.totalorder %s29_s28, %s29_s28 }
  0x1d   :  { %p1483_p11 = scmp.ne.s32.totalorder %s29_s28, %s1482_s9  ;;  %p1488_p13 = scmp.lt.s32.totalorder %s1482_s9, %s1482_s9 }
  0x1f   :  { %p1489_p0 = por %p1488_p13, %p1487_p12 }
  0x21   :  { %p1490_p1 = pnand %p1489_p0, %p1483_p11 }
  0x23   :  { %1493 = shalt.err (!%p1490_p1)
}
  0x24   :  { %s1526_s0 = smov 256   ;;  %s1527_s10 = smov 16  }
  0x25   :  { %34 = dma.hbm_to_vmem [thread:$0]  %s1635_s1, 16384, %s29_s28, [#allocation6], %s1526_s0, %s1526_s0, %s1527_s10  }
  0x26   :  { %1516 = dma.done.wait [#allocation3], 1024  }
  0x27   :  { %1517 = vsyncadd [#allocation3], 4294966272 }
  0x28   :  { %1518 = dma.done.wait [#allocation6], 16384  }
  0x29   :  { %1519 = vsyncadd [#allocation6], 4294950912  ;;  %v1242_v0 = vld [vmem:[#allocation5 + $0x4] ss:$16 sps:$4 sm:$0xff]   ;;  %v1244_v1 = vld [vmem:[#allocation5 + $0xc] ss:$16 sps:$4 sm:$0xff]  }
  0x2a   :  { %845 = vmatprep.subr.bf16.mxu0 %v1242_v0  ;;  %v1246_v2 = vld [vmem:[#allocation5] ss:$16 sps:$4 sm:$0xff]   ;;  %v1247_v3 = vld [vmem:[#allocation5 + $0x8] ss:$16 sps:$4 sm:$0xff]   ;;  %931 = vmatprep.subr.bf16.mxu1 %v1244_v1  ;;  %v1248_v4 = vld [vmem:[#allocation5 + $0x24] ss:$16 sps:$4 sm:$0xff]  }
  0x2b   :  { %846 = vmatpush1.bf16.msra.mxu0 %v1246_v2  ;;  %932 = vmatpush1.bf16.msra.mxu1 %v1247_v3  ;;  %v1250_v5 = vld [vmem:[#allocation5 + $0x2c] ss:$16 sps:$4 sm:$0xff]   ;;  %v1252_v6 = vld [vmem:[#allocation5 + $0x20] ss:$16 sps:$4 sm:$0xff]   ;;  %v1253_v7 = vld [vmem:[#allocation5 + $0x28] ss:$16 sps:$4 sm:$0xff]  }
  0x2c   :  { %847 = vmatprep.subr.bf16.mxu0 %v1248_v4  ;;  %933 = vmatprep.subr.bf16.mxu1 %v1250_v5  ;;  %v1254_v8 = vld [vmem:[#allocation5 + $0x44] ss:$16 sps:$4 sm:$0xff]   ;;  %v1256_v9 = vld [vmem:[#allocation5 + $0x4c] ss:$16 sps:$4 sm:$0xff]   ;;  %v1258_v10 = vld [vmem:[#allocation5 + $0x40] ss:$16 sps:$4 sm:$0xff]  }
  0x2d   :  { %v1259_v11 = vld [vmem:[#allocation5 + $0x48] ss:$16 sps:$4 sm:$0xff]   ;;  %v1260_v12 = vld [vmem:[#allocation5 + $0x64] ss:$16 sps:$4 sm:$0xff]   ;;  %v1262_v13 = vld [vmem:[#allocation5 + $0x6c] ss:$16 sps:$4 sm:$0xff]  }
  0x2e   :  { %v1264_v14 = vld [vmem:[#allocation5 + $0x60] ss:$16 sps:$4 sm:$0xff]   ;;  %v1265_v15 = vld [vmem:[#allocation5 + $0x68] ss:$16 sps:$4 sm:$0xff]   ;;  %v1266_v16 = vld [vmem:[#allocation5 + $0x84] ss:$16 sps:$4 sm:$0xff]  }
  0x2f   :  { %848 = vmatpush1.bf16.msra.mxu0 %v1252_v6  ;;  %934 = vmatpush1.bf16.msra.mxu1 %v1253_v7  ;;  %v1268_v17 = vld [vmem:[#allocation5 + $0x8c] ss:$16 sps:$4 sm:$0xff]   ;;  %v1270_v18 = vld [vmem:[#allocation5 + $0x80] ss:$16 sps:$4 sm:$0xff]   ;;  %v1271_v19 = vld [vmem:[#allocation5 + $0x88] ss:$16 sps:$4 sm:$0xff]  }
  0x30   :  { %849 = vmatprep.subr.bf16.mxu0 %v1254_v8  ;;  %935 = vmatprep.subr.bf16.mxu1 %v1256_v9  ;;  %v1272_v20 = vld [vmem:[#allocation5 + $0xa4] ss:$16 sps:$4 sm:$0xff]   ;;  %v1274_v21 = vld [vmem:[#allocation5 + $0xac] ss:$16 sps:$4 sm:$0xff]   ;;  %v1276_v22 = vld [vmem:[#allocation5 + $0xa0] ss:$16 sps:$4 sm:$0xff]  }
  0x31   :  { %v1277_v23 = vld [vmem:[#allocation5 + $0xa8] ss:$16 sps:$4 sm:$0xff]   ;;  %v1278_v24 = vld [vmem:[#allocation5 + $0xc4] ss:$16 sps:$4 sm:$0xff]   ;;  %v1280_v25 = vld [vmem:[#allocation5 + $0xcc] ss:$16 sps:$4 sm:$0xff]  }
  0x32   :  { %v1282_v26 = vld [vmem:[#allocation5 + $0xc0] ss:$16 sps:$4 sm:$0xff]   ;;  %v1283_v27 = vld [vmem:[#allocation5 + $0xc8] ss:$16 sps:$4 sm:$0xff]   ;;  %v1284_v28 = vld [vmem:[#allocation5 + $0xe4] ss:$16 sps:$4 sm:$0xff]  }
  0x33   :  { %850 = vmatpush1.bf16.msra.mxu0 %v1258_v10  ;;  %936 = vmatpush1.bf16.msra.mxu1 %v1259_v11  ;;  %v1286_v29 = vld [vmem:[#allocation5 + $0xec] ss:$16 sps:$4 sm:$0xff]   ;;  %v1288_v30 = vld [vmem:[#allocation5 + $0xe0] ss:$16 sps:$4 sm:$0xff]   ;;  %v1289_v31 = vld [vmem:[#allocation5 + $0xe8] ss:$16 sps:$4 sm:$0xff]  }
  0x34   :  { %851 = vmatprep.subr.bf16.mxu0 %v1260_v12  ;;  %937 = vmatprep.subr.bf16.mxu1 %v1262_v13  ;;  %v1290_v32 = vld [vmem:[#allocation5 + $0x104] ss:$16 sps:$4 sm:$0xff]   ;;  %v1292_v33 = vld [vmem:[#allocation5 + $0x10c] ss:$16 sps:$4 sm:$0xff]   ;;  %v1294_v34 = vld [vmem:[#allocation5 + $0x100] ss:$16 sps:$4 sm:$0xff]  }
  0x35   :  { %v1295_v35 = vld [vmem:[#allocation5 + $0x108] ss:$16 sps:$4 sm:$0xff]   ;;  %v1296_v36 = vld [vmem:[#allocation5 + $0x124] ss:$16 sps:$4 sm:$0xff]   ;;  %v1298_v37 = vld [vmem:[#allocation5 + $0x12c] ss:$16 sps:$4 sm:$0xff]  }
  0x36   :  { %v1300_v38 = vld [vmem:[#allocation5 + $0x120] ss:$16 sps:$4 sm:$0xff]   ;;  %v1301_v39 = vld [vmem:[#allocation5 + $0x128] ss:$16 sps:$4 sm:$0xff]   ;;  %v1302_v40 = vld [vmem:[#allocation5 + $0x144] ss:$16 sps:$4 sm:$0xff]  }
  0x37   :  { %852 = vmatpush1.bf16.msra.mxu0 %v1264_v14  ;;  %938 = vmatpush1.bf16.msra.mxu1 %v1265_v15  ;;  %v1304_v41 = vld [vmem:[#allocation5 + $0x14c] ss:$16 sps:$4 sm:$0xff]   ;;  %v1306_v42 = vld [vmem:[#allocation5 + $0x140] ss:$16 sps:$4 sm:$0xff]   ;;  %v1307_v43 = vld [vmem:[#allocation5 + $0x148] ss:$16 sps:$4 sm:$0xff]  }
  0x38   :  { %853 = vmatprep.subr.bf16.mxu0 %v1266_v16  ;;  %939 = vmatprep.subr.bf16.mxu1 %v1268_v17  ;;  %v1308_v44 = vld [vmem:[#allocation5 + $0x164] ss:$16 sps:$4 sm:$0xff]   ;;  %v1310_v45 = vld [vmem:[#allocation5 + $0x16c] ss:$16 sps:$4 sm:$0xff]   ;;  %v1312_v48 = vld [vmem:[#allocation5 + $0x160] ss:$16 sps:$4 sm:$0xff]  }
  0x39   :  { %v1576_v46 = vld [vmem:[#allocation2 + $0x8] sm:$0xff]  ;;  %v1314_v51 = vld [vmem:[#allocation5 + $0x184] ss:$16 sps:$4 sm:$0xff]   ;;  %v1318_v53 = vld [vmem:[#allocation5 + $0x180] ss:$16 sps:$4 sm:$0xff]  }
  0x3a   :  { %v1578_v47 = vld [vmem:[#allocation2 + $0x28] sm:$0xff]  ;;  %v1320_v55 = vld [vmem:[#allocation5 + $0x1a4] ss:$16 sps:$4 sm:$0xff]   ;;  %v1324_v57 = vld [vmem:[#allocation5 + $0x1a0] ss:$16 sps:$4 sm:$0xff]  }
  0x3b   :  { %854 = vmatpush1.bf16.msra.mxu0 %v1270_v18  ;;  %940 = vmatpush1.bf16.msra.mxu1 %v1271_v19  ;;  %v1313_v49 = vld [vmem:[#allocation5 + $0x168] ss:$16 sps:$4 sm:$0xff]   ;;  %v52_v50 = vpack.c.bf16 %v1578_v47, %v1576_v46  ;;  %v1316_v52 = vld [vmem:[#allocation5 + $0x18c] ss:$16 sps:$4 sm:$0xff]   ;;  %v1326_v59 = vld [vmem:[#allocation5 + $0x1c4] ss:$16 sps:$4 sm:$0xff]  }
  0x3c   :  { %855 = vmatprep.subr.bf16.mxu0 %v1272_v20  ;;  %941 = vmatprep.subr.bf16.mxu1 %v1274_v21  ;;  %v1319_v54 = vld [vmem:[#allocation5 + $0x188] ss:$16 sps:$4 sm:$0xff]   ;;  %v1322_v56 = vld [vmem:[#allocation5 + $0x1ac] ss:$16 sps:$4 sm:$0xff]   ;;  %v1330_v61 = vld [vmem:[#allocation5 + $0x1c0] ss:$16 sps:$4 sm:$0xff]  }
  0x3d   :  { %877 = vmatprep.mubr.bf16.mxu0 %v52_v50  ;;  %963 = vmatprep.mubr.bf16.mxu1 %v52_v50  ;;  %v1325_v58 = vld [vmem:[#allocation5 + $0x1a8] ss:$16 sps:$4 sm:$0xff]   ;;  %v1328_v60 = vld [vmem:[#allocation5 + $0x1cc] ss:$16 sps:$4 sm:$0xff]   ;;  %v1332_v63 = vld [vmem:[#allocation5 + $0x1e4] ss:$16 sps:$4 sm:$0xff]  }
  0x3e   :  { %v1331_v62 = vld [vmem:[#allocation5 + $0x1c8] ss:$16 sps:$4 sm:$0xff]   ;;  %v1334_v0 = vld [vmem:[#allocation5 + $0x1ec] ss:$16 sps:$4 sm:$0xff]   ;;  %v1336_v1 = vld [vmem:[#allocation5 + $0x1e0] ss:$16 sps:$4 sm:$0xff]  }
  0x3f   :  { %856 = vmatpush1.bf16.msra.mxu0 %v1276_v22  ;;  %942 = vmatpush1.bf16.msra.mxu1 %v1277_v23  ;;  %v1337_v2 = vld [vmem:[#allocation5 + $0x1e8] ss:$16 sps:$4 sm:$0xff]   ;;  %v1340_v3 = vld [vmem:[#allocation5 + $0x204] ss:$16 sps:$4 sm:$0xff]   ;;  %v1343_v6 = vld [vmem:[#allocation5 + $0x20c] ss:$16 sps:$4 sm:$0xff]  }
  0x40   :  { %857 = vmatprep.subr.bf16.mxu0 %v1278_v24  ;;  %943 = vmatprep.subr.bf16.mxu1 %v1280_v25  ;;  %v1582_v4 = vld [vmem:[#allocation2] sm:$0xff]  ;;  %v1341_v8 = vld [vmem:[#allocation5 + $0x208] ss:$16 sps:$4 sm:$0xff]   ;;  %v1349_v11 = vld [vmem:[#allocation5 + $0x22c] ss:$16 sps:$4 sm:$0xff]  }
  0x41   :  { %v1584_v5 = vld [vmem:[#allocation2 + $0x20] sm:$0xff]  ;;  %v1347_v13 = vld [vmem:[#allocation5 + $0x228] ss:$16 sps:$4 sm:$0xff]   ;;  %v1355_v15 = vld [vmem:[#allocation5 + $0x24c] ss:$16 sps:$4 sm:$0xff]  }
  0x42   :  { %v1338_v7 = vld [vmem:[#allocation5 + $0x200] ss:$16 sps:$4 sm:$0xff]   ;;  %v51_v9 = vpack.c.bf16 %v1584_v5, %v1582_v4  ;;  %v1346_v10 = vld [vmem:[#allocation5 + $0x224] ss:$16 sps:$4 sm:$0xff]   ;;  %v1353_v17 = vld [vmem:[#allocation5 + $0x248] ss:$16 sps:$4 sm:$0xff]  }
  0x43   :  { %858 = vmatpush1.bf16.msra.mxu0 %v1282_v26  ;;  %944 = vmatpush1.bf16.msra.mxu1 %v1283_v27  ;;  %v1344_v12 = vld [vmem:[#allocation5 + $0x220] ss:$16 sps:$4 sm:$0xff]   ;;  %v1352_v14 = vld [vmem:[#allocation5 + $0x244] ss:$16 sps:$4 sm:$0xff]   ;;  %v1361_v19 = vld [vmem:[#allocation5 + $0x26c] ss:$16 sps:$4 sm:$0xff]  }
  0x44   :  { %859 = vmatprep.subr.bf16.mxu0 %v1284_v28  ;;  %945 = vmatprep.subr.bf16.mxu1 %v1286_v29  ;;  %v1350_v16 = vld [vmem:[#allocation5 + $0x240] ss:$16 sps:$4 sm:$0xff]   ;;  %v1358_v18 = vld [vmem:[#allocation5 + $0x264] ss:$16 sps:$4 sm:$0xff]   ;;  %v1359_v21 = vld [vmem:[#allocation5 + $0x268] ss:$16 sps:$4 sm:$0xff]  }
  0x45   :  { %v1356_v20 = vld [vmem:[#allocation5 + $0x260] ss:$16 sps:$4 sm:$0xff]   ;;  %v1364_v22 = vld [vmem:[#allocation5 + $0x284] ss:$16 sps:$4 sm:$0xff]   ;;  %v1367_v23 = vld [vmem:[#allocation5 + $0x28c] ss:$16 sps:$4 sm:$0xff]  }
  0x46   :  { %v1362_v24 = vld [vmem:[#allocation5 + $0x280] ss:$16 sps:$4 sm:$0xff]   ;;  %v1365_v25 = vld [vmem:[#allocation5 + $0x288] ss:$16 sps:$4 sm:$0xff]   ;;  %v1370_v26 = vld [vmem:[#allocation5 + $0x2a4] ss:$16 sps:$4 sm:$0xff]  }
  0x47   :  { %860 = vmatpush1.bf16.msra.mxu0 %v1288_v30  ;;  %946 = vmatpush1.bf16.msra.mxu1 %v1289_v31  ;;  %v1373_v27 = vld [vmem:[#allocation5 + $0x2ac] ss:$16 sps:$4 sm:$0xff]   ;;  %v1368_v28 = vld [vmem:[#allocation5 + $0x2a0] ss:$16 sps:$4 sm:$0xff]   ;;  %v1371_v29 = vld [vmem:[#allocation5 + $0x2a8] ss:$16 sps:$4 sm:$0xff]  }
  0x48   :  { %861 = vmatprep.subr.bf16.mxu0 %v1290_v32  ;;  %947 = vmatprep.subr.bf16.mxu1 %v1292_v33  ;;  %v1376_v30 = vld [vmem:[#allocation5 + $0x2c4] ss:$16 sps:$4 sm:$0xff]   ;;  %v1379_v31 = vld [vmem:[#allocation5 + $0x2cc] ss:$16 sps:$4 sm:$0xff]   ;;  %v1395_v50 = vld [vmem:[#allocation5 + $0x328] ss:$16 sps:$4 sm:$0xff]  }
  0x49   :  { %v1588_v32 = vld [vmem:[#allocation2 + $0x18] sm:$0xff] }
  0x4a   :  { %v1590_v33 = vld [vmem:[#allocation2 + $0x38] sm:$0xff] }
  0x4b   :  { %862 = vmatpush1.bf16.msra.mxu0 %v1294_v34  ;;  %948 = vmatpush1.bf16.msra.mxu1 %v1295_v35  ;;  %v1374_v34 = vld [vmem:[#allocation5 + $0x2c0] ss:$16 sps:$4 sm:$0xff]   ;;  %v1377_v35 = vld [vmem:[#allocation5 + $0x2c8] ss:$16 sps:$4 sm:$0xff]  }
  0x4c   :  { %863 = vmatprep.subr.bf16.mxu0 %v1296_v36  ;;  %949 = vmatprep.subr.bf16.mxu1 %v1298_v37  ;;  %v54_v36 = vpack.c.bf16 %v1590_v33, %v1588_v32  ;;  %v1382_v37 = vld [vmem:[#allocation5 + $0x2e4] ss:$16 sps:$4 sm:$0xff]  }
  0x4f   :  { %864 = vmatpush1.bf16.msra.mxu0 %v1300_v38  ;;  %950 = vmatpush1.bf16.msra.mxu1 %v1301_v39  ;;  %v1385_v38 = vld [vmem:[#allocation5 + $0x2ec] ss:$16 sps:$4 sm:$0xff]   ;;  %v1380_v39 = vld [vmem:[#allocation5 + $0x2e0] ss:$16 sps:$4 sm:$0xff]  }
  0x50   :  { %865 = vmatprep.subr.bf16.mxu0 %v1302_v40  ;;  %951 = vmatprep.subr.bf16.mxu1 %v1304_v41  ;;  %v1383_v40 = vld [vmem:[#allocation5 + $0x2e8] ss:$16 sps:$4 sm:$0xff]   ;;  %v1388_v41 = vld [vmem:[#allocation5 + $0x304] ss:$16 sps:$4 sm:$0xff]  }
  0x53   :  { %866 = vmatpush1.bf16.msra.mxu0 %v1306_v42  ;;  %952 = vmatpush1.bf16.msra.mxu1 %v1307_v43  ;;  %v1391_v42 = vld [vmem:[#allocation5 + $0x30c] ss:$16 sps:$4 sm:$0xff]   ;;  %v1386_v43 = vld [vmem:[#allocation5 + $0x300] ss:$16 sps:$4 sm:$0xff]  }
  0x54   :  { %867 = vmatprep.subr.bf16.mxu0 %v1308_v44  ;;  %953 = vmatprep.subr.bf16.mxu1 %v1310_v45  ;;  %v1389_v44 = vld [vmem:[#allocation5 + $0x308] ss:$16 sps:$4 sm:$0xff]   ;;  %v1394_v45 = vld [vmem:[#allocation5 + $0x324] ss:$16 sps:$4 sm:$0xff]  }
  0x57   :  { %868 = vmatpush1.bf16.msra.mxu0 %v1312_v48  ;;  %954 = vmatpush1.bf16.msra.mxu1 %v1313_v49  ;;  %v1397_v48 = vld [vmem:[#allocation5 + $0x32c] ss:$16 sps:$4 sm:$0xff]   ;;  %v1392_v49 = vld [vmem:[#allocation5 + $0x320] ss:$16 sps:$4 sm:$0xff]  }
  0x58   :  { %869 = vmatprep.subr.bf16.mxu0 %v1314_v51  ;;  %955 = vmatprep.subr.bf16.mxu1 %v1316_v52  ;;  %v1400_v51 = vld [vmem:[#allocation5 + $0x344] ss:$16 sps:$4 sm:$0xff]   ;;  %v1403_v52 = vld [vmem:[#allocation5 + $0x34c] ss:$16 sps:$4 sm:$0xff]  }
  0x5b   :  { %870 = vmatpush1.bf16.msra.mxu0 %v1318_v53  ;;  %956 = vmatpush1.bf16.msra.mxu1 %v1319_v54  ;;  %v1398_v53 = vld [vmem:[#allocation5 + $0x340] ss:$16 sps:$4 sm:$0xff]   ;;  %v1401_v54 = vld [vmem:[#allocation5 + $0x348] ss:$16 sps:$4 sm:$0xff]  }
  0x5c   :  { %871 = vmatprep.subr.bf16.mxu0 %v1320_v55  ;;  %957 = vmatprep.subr.bf16.mxu1 %v1322_v56  ;;  %v1406_v55 = vld [vmem:[#allocation5 + $0x364] ss:$16 sps:$4 sm:$0xff]   ;;  %v1409_v56 = vld [vmem:[#allocation5 + $0x36c] ss:$16 sps:$4 sm:$0xff]  }
  0x5f   :  { %872 = vmatpush1.bf16.msra.mxu0 %v1324_v57  ;;  %958 = vmatpush1.bf16.msra.mxu1 %v1325_v58  ;;  %v1404_v57 = vld [vmem:[#allocation5 + $0x360] ss:$16 sps:$4 sm:$0xff]   ;;  %v1407_v58 = vld [vmem:[#allocation5 + $0x368] ss:$16 sps:$4 sm:$0xff]  }
  0x60   :  { %873 = vmatprep.subr.bf16.mxu0 %v1326_v59  ;;  %959 = vmatprep.subr.bf16.mxu1 %v1328_v60  ;;  %v1412_v59 = vld [vmem:[#allocation5 + $0x384] ss:$16 sps:$4 sm:$0xff]   ;;  %v1415_v60 = vld [vmem:[#allocation5 + $0x38c] ss:$16 sps:$4 sm:$0xff]  }
  0x63   :  { %874 = vmatpush1.bf16.msra.mxu0 %v1330_v61  ;;  %960 = vmatpush1.bf16.msra.mxu1 %v1331_v62  ;;  %v1410_v61 = vld [vmem:[#allocation5 + $0x380] ss:$16 sps:$4 sm:$0xff]   ;;  %v1413_v62 = vld [vmem:[#allocation5 + $0x388] ss:$16 sps:$4 sm:$0xff]  }
  0x64   :  { %875 = vmatprep.subr.bf16.mxu0 %v1332_v63  ;;  %961 = vmatprep.subr.bf16.mxu1 %v1334_v0  ;;  %v1418_v63 = vld [vmem:[#allocation5 + $0x3a4] ss:$16 sps:$4 sm:$0xff]   ;;  %v1421_v0 = vld [vmem:[#allocation5 + $0x3ac] ss:$16 sps:$4 sm:$0xff]  }
  0x67   :  { %876 = vmatpush1.bf16.msra.mxu0 %v1336_v1  ;;  %962 = vmatpush1.bf16.msra.mxu1 %v1337_v2  ;;  %v1416_v1 = vld [vmem:[#allocation5 + $0x3a0] ss:$16 sps:$4 sm:$0xff]   ;;  %v1419_v2 = vld [vmem:[#allocation5 + $0x3a8] ss:$16 sps:$4 sm:$0xff]  }
  0x68   :  { %888 = vmatprep.subr.bf16.mxu0 %v1340_v3  ;;  %974 = vmatprep.subr.bf16.mxu1 %v1343_v6  ;;  %v1424_v3 = vld [vmem:[#allocation5 + $0x3c4] ss:$16 sps:$4 sm:$0xff]   ;;  %v1427_v6 = vld [vmem:[#allocation5 + $0x3cc] ss:$16 sps:$4 sm:$0xff]  }
  0x6a   :  { %878 = vmatmul.mubr.bf16.vlgmr.msra.gmra.mrb[0].mxu0 %v51_v9  ;;  %964 = vmatmul.mubr.bf16.vlgmr.msra.gmra.mrb[0].mxu1 %v51_v9  ;;  %v1430_v9 = vld [vmem:[#allocation5 + $0x3e4] ss:$16 sps:$4 sm:$0xff]  }
  0x6b   :  { %889 = vmatpush1.bf16.msra.mxu0 %v1338_v7  ;;  %975 = vmatpush1.bf16.msra.mxu1 %v1341_v8  ;;  %v1422_v7 = vld [vmem:[#allocation5 + $0x3c0] ss:$16 sps:$4 sm:$0xff]   ;;  %v1425_v8 = vld [vmem:[#allocation5 + $0x3c8] ss:$16 sps:$4 sm:$0xff]  }
  0x6c   :  { %890 = vmatprep.subr.bf16.mxu0 %v1346_v10  ;;  %976 = vmatprep.subr.bf16.mxu1 %v1349_v11  ;;  %v1433_v10 = vld [vmem:[#allocation5 + $0x3ec] ss:$16 sps:$4 sm:$0xff]   ;;  %v1428_v11 = vld [vmem:[#allocation5 + $0x3e0] ss:$16 sps:$4 sm:$0xff]  }
  0x6d   :  { %920 = vmatprep.mubr.bf16.mxu0 %v54_v36  ;;  %1006 = vmatprep.mubr.bf16.mxu1 %v54_v36 }
  0x6f   :  { %891 = vmatpush1.bf16.msra.mxu0 %v1344_v12  ;;  %977 = vmatpush1.bf16.msra.mxu1 %v1347_v13  ;;  %v1431_v12 = vld [vmem:[#allocation5 + $0x3e8] ss:$16 sps:$4 sm:$0xff]   ;;  %v1594_v13 = vld [vmem:[#allocation2 + $0x10] sm:$0xff] }
  0x70   :  { %892 = vmatprep.subr.bf16.mxu0 %v1352_v14  ;;  %978 = vmatprep.subr.bf16.mxu1 %v1355_v15  ;;  %v1596_v14 = vld [vmem:[#allocation2 + $0x30] sm:$0xff] }
  0x71   :  { %v53_v15 = vpack.c.bf16 %v1596_v14, %v1594_v13 }
  0x73   :  { %893 = vmatpush1.bf16.msra.mxu0 %v1350_v16  ;;  %979 = vmatpush1.bf16.msra.mxu1 %v1353_v17  ;;  %v185_v16 = vlaneseq }
  0x74   :  { %894 = vmatprep.subr.bf16.mxu0 %v1358_v18  ;;  %980 = vmatprep.subr.bf16.mxu1 %v1361_v19 }
  0x75   :  { %v186_v17 = vshrl.u32 %v185_v16, 7 }
  0x77   :  { %895 = vmatpush1.bf16.msra.mxu0 %v1356_v20  ;;  %981 = vmatpush1.bf16.msra.mxu1 %v1359_v21  ;;  %v187_v18 = vsub.s32 0, %v186_v17  ;;  %v195_v19 = vsub.s32 2, %v186_v17  ;;  %v183_v20 = vld [vmem:[%s1636_s2] sm:$0xf]  ;;  %v191_v21 = vsub.s32 1, %v186_v17 }
  0x78   :  { %896 = vmatprep.subr.bf16.mxu0 %v1364_v22  ;;  %982 = vmatprep.subr.bf16.mxu1 %v1367_v23  ;;  %v199_v22 = vsub.s32 3, %v186_v17 }
  0x79   :  { %v188_v23 = vrot.slane %v183_v20, %v187_v18 }
  0x7b   :  { %897 = vmatpush1.bf16.msra.mxu0 %v1362_v24  ;;  %983 = vmatpush1.bf16.msra.mxu1 %v1365_v25  ;;  %v196_v24 = vrot.slane %v183_v20, %v195_v19  ;;  %v192_v25 = vrot.slane %v183_v20, %v191_v21 }
  0x7c   :  { %898 = vmatprep.subr.bf16.mxu0 %v1370_v26  ;;  %984 = vmatprep.subr.bf16.mxu1 %v1373_v27  ;;  %v200_v26 = vrot.slane %v183_v20, %v199_v22 }
  0x7f   :  { %899 = vmatpush1.bf16.msra.mxu0 %v1368_v28  ;;  %985 = vmatpush1.bf16.msra.mxu1 %v1371_v29 }
  0x80   :  { %900 = vmatprep.subr.bf16.mxu0 %v1376_v30  ;;  %986 = vmatprep.subr.bf16.mxu1 %v1379_v31 }
  0x83   :  { %901 = vmatpush1.bf16.msra.mxu0 %v1374_v34  ;;  %987 = vmatpush1.bf16.msra.mxu1 %v1377_v35 }
  0x84   :  { %902 = vmatprep.subr.bf16.mxu0 %v1382_v37  ;;  %988 = vmatprep.subr.bf16.mxu1 %v1385_v38 }
  0x87   :  { %903 = vmatpush1.bf16.msra.mxu0 %v1380_v39  ;;  %989 = vmatpush1.bf16.msra.mxu1 %v1383_v40 }
  0x88   :  { %904 = vmatprep.subr.bf16.mxu0 %v1388_v41  ;;  %990 = vmatprep.subr.bf16.mxu1 %v1391_v42 }
  0x8b   :  { %905 = vmatpush1.bf16.msra.mxu0 %v1386_v43  ;;  %991 = vmatpush1.bf16.msra.mxu1 %v1389_v44 }
  0x8c   :  { %906 = vmatprep.subr.bf16.mxu0 %v1394_v45  ;;  %992 = vmatprep.subr.bf16.mxu1 %v1397_v48 }
  0x8f   :  { %907 = vmatpush1.bf16.msra.mxu0 %v1392_v49  ;;  %993 = vmatpush1.bf16.msra.mxu1 %v1395_v50 }
  0x90   :  { %908 = vmatprep.subr.bf16.mxu0 %v1400_v51  ;;  %994 = vmatprep.subr.bf16.mxu1 %v1403_v52 }
  0x93   :  { %909 = vmatpush1.bf16.msra.mxu0 %v1398_v53  ;;  %995 = vmatpush1.bf16.msra.mxu1 %v1401_v54 }
  0x94   :  { %910 = vmatprep.subr.bf16.mxu0 %v1406_v55  ;;  %996 = vmatprep.subr.bf16.mxu1 %v1409_v56 }
  0x97   :  { %911 = vmatpush1.bf16.msra.mxu0 %v1404_v57  ;;  %997 = vmatpush1.bf16.msra.mxu1 %v1407_v58 }
  0x98   :  { %912 = vmatprep.subr.bf16.mxu0 %v1412_v59  ;;  %998 = vmatprep.subr.bf16.mxu1 %v1415_v60 }
  0x9b   :  { %913 = vmatpush1.bf16.msra.mxu0 %v1410_v61  ;;  %999 = vmatpush1.bf16.msra.mxu1 %v1413_v62 }
  0x9c   :  { %914 = vmatprep.subr.bf16.mxu0 %v1418_v63  ;;  %1000 = vmatprep.subr.bf16.mxu1 %v1421_v0 }
  0x9f   :  { %915 = vmatpush1.bf16.msra.mxu0 %v1416_v1  ;;  %1001 = vmatpush1.bf16.msra.mxu1 %v1419_v2 }
  0xa0   :  { %916 = vmatprep.subr.bf16.mxu0 %v1424_v3  ;;  %1002 = vmatprep.subr.bf16.mxu1 %v1427_v6 }
  0xa3   :  { %917 = vmatpush1.bf16.msra.mxu0 %v1422_v7  ;;  %1003 = vmatpush1.bf16.msra.mxu1 %v1425_v8 }
  0xa4   :  { %918 = vmatprep.subr.bf16.mxu0 %v1430_v9  ;;  %1004 = vmatprep.subr.bf16.mxu1 %v1433_v10 }
  0xa7   :  { %919 = vmatpush1.bf16.msra.mxu0 %v1428_v11  ;;  %1005 = vmatpush1.bf16.msra.mxu1 %v1431_v12 }
  0xaa   :  { %921 = vmatmul.mubr.bf16.vlgmr.msra.gmra.mrb[0].mxu0 %v53_v15  ;;  %1007 = vmatmul.mubr.bf16.vlgmr.msra.gmra.mrb[0].mxu1 %v53_v15 }
 0x17d   :  { %v922_v27 = vpop.f32.mrb[0].mxu0  ;;  %v1008_v28 = vpop.f32.mrb[0].mxu1 }
 0x17e   :  { %v1219_v29 = vadd.f32 %v922_v27, %v188_v23  ;;  %v1223_v30 = vadd.f32 %v1008_v28, %v196_v24  ;;  %v924_v31 = vpop.f32.mrb[1].mxu0  ;;  %v1010_v34 = vpop.f32.mrb[1].mxu1 }
 0x17f   :  { %v1220_v35 = vadd.f32 %v924_v31, %v192_v25  ;;  %v1224_v36 = vadd.f32 %v1010_v34, %v200_v26  ;;  %v926_v37 = vpop.f32.mrb[2].mxu0  ;;  %v1012_v38 = vpop.f32.mrb[2].mxu1 }
 0x180   :  { %v1017_v39 = vmul.f32 0.5, %v1219_v29  ;;  %v1019_v40 = vmul.f32 0.5, %v1223_v30  ;;  %v1221_v41 = vadd.f32 %v926_v37, %v188_v23  ;;  %v1225_v42 = vadd.f32 %v1012_v38, %v196_v24  ;;  %v928_v43 = vpop.f32.mrb[3].mxu0  ;;  %v1014_v44 = vpop.f32.mrb[3].mxu1 }
 0x181   :  { %v1018_v45 = vmul.f32 0.5, %v1220_v35  ;;  %v1020_v48 = vmul.f32 0.5, %v1224_v36  ;;  %v1222_v49 = vadd.f32 %v928_v43, %v192_v25  ;;  %v1226_v50 = vadd.f32 %v1014_v44, %v200_v26 }
 0x182   :  { %1434 = vtanh.f32 %v1017_v39  ;;  %v1021_v51 = vmul.f32 0.5, %v1221_v41  ;;  %v1023_v52 = vmul.f32 0.5, %v1225_v42 }
 0x183   :  { %1436 = vtanh.f32 %v1019_v40  ;;  %v1022_v53 = vmul.f32 0.5, %v1222_v49  ;;  %v1024_v54 = vmul.f32 0.5, %v1226_v50 }
 0x184   :  { %1438 = vtanh.f32 %v1018_v45 }
 0x185   :  { %1440 = vtanh.f32 %v1020_v48 }
 0x186   :  { %1442 = vtanh.f32 %v1021_v51 }
 0x187   :  { %1444 = vtanh.f32 %v1023_v52 }
 0x188   :  { %1446 = vtanh.f32 %v1022_v53 }
 0x189   :  { %1448 = vtanh.f32 %v1024_v54 }
 0x18c   :  { %v1435_v55 = vpop.eup %1434 }
 0x18d   :  { %v1437_v56 = vpop.eup %1436  ;;  %v1033_v57 = vadd.f32 1.0, %v1435_v55 }
 0x18e   :  { %v1439_v58 = vpop.eup %1438  ;;  %v1035_v59 = vadd.f32 1.0, %v1437_v56 }
 0x18f   :  { %v1441_v60 = vpop.eup %1440  ;;  %v1041_v61 = vmul.f32 0.5, %v1033_v57  ;;  %v1034_v62 = vadd.f32 1.0, %v1439_v58 }
 0x190   :  { %v1443_v63 = vpop.eup %1442  ;;  %v1043_v0 = vmul.f32 0.5, %v1035_v59  ;;  %v1036_v1 = vadd.f32 1.0, %v1441_v60 }
 0x191   :  { %v1445_v2 = vpop.eup %1444  ;;  %v1049_v3 = vmul.f32 %v1041_v61, %v1582_v4  ;;  %v1042_v6 = vmul.f32 0.5, %v1034_v62  ;;  %v1037_v7 = vadd.f32 1.0, %v1443_v63 }
 0x192   :  { %v1447_v8 = vpop.eup %1446  ;;  %v1051_v9 = vmul.f32 %v1043_v0, %v1594_v13  ;;  %v1044_v10 = vmul.f32 0.5, %v1036_v1  ;;  %v1039_v11 = vadd.f32 1.0, %v1445_v2 }
 0x193   :  { %v1449_v12 = vpop.eup %1448  ;;  %v1057_v15 = vadd.f32 %v1049_v3, %v1582_v4  ;;  %v1050_v16 = vmul.f32 %v1042_v6, %v1576_v46  ;;  %v1045_v17 = vmul.f32 0.5, %v1037_v7  ;;  %v1038_v18 = vadd.f32 1.0, %v1447_v8 }
 0x194   :  { %v1059_v19 = vadd.f32 %v1051_v9, %v1594_v13  ;;  %v1052_v20 = vmul.f32 %v1044_v10, %v1588_v32  ;;  %v1047_v21 = vmul.f32 0.5, %v1039_v11  ;;  %v1040_v22 = vadd.f32 1.0, %v1449_v12 }
 0x195   :  { %1065 = vst [vmem:[#allocation7] sm:$0xff] %v1057_v15  ;;  %v1058_v23 = vadd.f32 %v1050_v16, %v1576_v46  ;;  %v1053_v24 = vmul.f32 %v1045_v17, %v1584_v5  ;;  %v1046_v25 = vmul.f32 0.5, %v1038_v18 }
 0x196   :  { %1067 = vst [vmem:[#allocation7 + $0x10] sm:$0xff] %v1059_v19  ;;  %v1060_v26 = vadd.f32 %v1052_v20, %v1588_v32  ;;  %v1055_v4 = vmul.f32 %v1047_v21, %v1596_v14  ;;  %v1048_v27 = vmul.f32 0.5, %v1040_v22 }
 0x197   :  { %1066 = vst [vmem:[#allocation7 + $0x8] sm:$0xff] %v1058_v23  ;;  %v1061_v28 = vadd.f32 %v1053_v24, %v1584_v5  ;;  %v1054_v13 = vmul.f32 %v1046_v25, %v1578_v47 }
 0x198   :  { %1068 = vst [vmem:[#allocation7 + $0x18] sm:$0xff] %v1060_v26  ;;  %v1063_v29 = vadd.f32 %v1055_v4, %v1596_v14  ;;  %v1056_v30 = vmul.f32 %v1048_v27, %v1590_v33 }
 0x199   :  { %1069 = vst [vmem:[#allocation7 + $0x20] sm:$0xff] %v1061_v28  ;;  %v1062_v46 = vadd.f32 %v1054_v13, %v1578_v47 }
 0x19a   :  { %1071 = vst [vmem:[#allocation7 + $0x30] sm:$0xff] %v1063_v29  ;;  %v1064_v31 = vadd.f32 %v1056_v30, %v1590_v33 }
 0x19b   :  { %1070 = vst [vmem:[#allocation7 + $0x28] sm:$0xff] %v1062_v46 }
 0x19c   :  { %1072 = vst [vmem:[#allocation7 + $0x38] sm:$0xff] %v1064_v31 }
 0x19d   :  { %1077 = vsyncadd [#allocation4], 512  ;;  %s1528_s2 = smov [#allocation7]  }
 0x19e   :  { %s1078_s14 = sshll.u32 %s1528_s2, 4  ;;  %s1079_s14 = int_to_ptr.vmem [resolvable:$true] %s1078_s14 }
 0x19f   :  { %s1494_s15 = scalar_lea.vmem %s1079_s14, 512  ;;  %s1498_s16 = scalar_lea.vmem %s1079_s14, 1024 }
 0x1a0   :  { %p1495_p2 = scmp.ne.s32.totalorder %s1079_s14, %s1494_s15  ;;  %p1499_p3 = scmp.lt.s32.totalorder %s1079_s14, %s1079_s14 }
 0x1a1   :  { %p1500_p4 = scmp.lt.s32.totalorder %s1498_s16, %s1494_s15 }
 0x1a3   :  { %p1501_p5 = por %p1500_p4, %p1499_p3 }
 0x1a5   :  { %p1502_p6 = pnand %p1501_p5, %p1495_p2 }
 0x1a7   :  { %1505 = shalt.err (!%p1502_p6)
}
 0x1a8   :  { %s1506_s19 = scalar_lea.hbm %s1637_s3, 512 }
 0x1a9   :  { %p1507_p7 = scmp.ne.s32.totalorder %s1637_s3, %s1506_s19  ;;  %p1510_p8 = scmp.lt.u32.totalorder %s1506_s19, %s1637_s3 }
 0x1ab   :  { %p1512_p9 = pnand %p1510_p8, %p1507_p7 }
 0x1ad   :  { %1515 = shalt.err (!%p1512_p9)
}
 0x1ae   :  { %1084 = dma.vmem_to_hbm [thread:$0]  %s1079_s14, 512, %s1637_s3, [#allocation4], %s1523_s23, %s1523_s23, %s1524_s24  }
 0x1af   :  { %1520 = dma.done.wait [#allocation4], 1024  }
 0x1b0   :  { %1521 = vsyncadd [#allocation4], 4294966272 }
 0x1b1   :  { %1088 = vsyncpa [#allocation3], 1 }
 0x1b2   :  { %1089 = vsyncpa [#allocation6], 1 }
 0x1b3   :  { %1090 = vsyncpa [#allocation4], 1 }

</bundles_post_ra>
